<compile_context>
chip_gen: v6e
topology: v6e:2x2x1
jax: 0.10.0
libtpu: 0.0.40
codegen_flags: <defaults>
</compile_context>

<pallas_src>
import functools

import jax
import jax.numpy as jnp
from jax.experimental import pallas as pl
from jax.experimental.pallas import tpu as pltpu

HEAD_PAD = 128  # lane-dense padded width for the fused (action + value) head


def policy_net_kernel(
    x_ref,      # (TB, obs_dim)  f32
    w1_ref,     # (obs_dim, H1)  bf16
    b1_ref,     # (1, H1)        f32
    w2_ref,     # (H1, H2)       bf16
    b2_ref,     # (1, H2)        f32
    wh_ref,     # (H2, HEAD_PAD) bf16, fused action+value head weights (zero padded)
    bh_ref,     # (1, HEAD_PAD)  f32,  fused action+value head bias    (zero padded)
    out_ref,    # (TB, HEAD_PAD) f32,  lane-dense output slab
):
    # Cast activations to bf16 in-register so all three matmuls run at the bf16
    # MXU rate; accumulation stays f32 via preferred_element_type.
    x = x_ref[...].astype(jnp.bfloat16)

    # shared layer 1: Linear + ReLU
    h1 = jnp.dot(x, w1_ref[...], preferred_element_type=jnp.float32) + b1_ref[...]
    h1 = jnp.maximum(h1, 0.0).astype(jnp.bfloat16)

    # shared layer 2: Linear + ReLU
    h2 = jnp.dot(h1, w2_ref[...], preferred_element_type=jnp.float32) + b2_ref[...]
    h2 = jnp.maximum(h2, 0.0).astype(jnp.bfloat16)

    # fused heads: one lane-dense matmul producing [logits | value | padding]
    out_ref[...] = (
        jnp.dot(h2, wh_ref[...], preferred_element_type=jnp.float32) + bh_ref[...]
    ).astype(out_ref.dtype)


def _round_up(n, m):
    return ((n + m - 1) // m) * m


def _batch_tile(B):
    """Batch tile: multiple of 8, capped at 2048; for B > 8 ensure >= 4 grid
    steps so both v7x TensorCores get >= 2 double-buffered steps each."""
    cap = 2048
    if B <= 8:
        return 8
    return min(cap, max(8, _round_up(pl.cdiv(B, 4), 8)))


def _forward_slab(x, p):
    """pallas_call producing the (B, 128) lane-dense [logits | value | pad] slab."""
    B, obs_dim = x.shape
    H1 = p["w1"].shape[1]
    H2 = p["w2"].shape[1]

    TB = _batch_tile(B)
    grid = (pl.cdiv(B, TB),)  # no explicit padding: OOB writes on the last
                              # partial block are masked; rows are independent.

    return pl.pallas_call(
        policy_net_kernel,
        out_shape=jax.ShapeDtypeStruct((B, HEAD_PAD), jnp.float32),
        grid=grid,
        in_specs=[
            pl.BlockSpec((TB, obs_dim), lambda i: (i, 0)),   # x: blocked over batch
            pl.BlockSpec((obs_dim, H1), lambda i: (0, 0)),   # weights stay VMEM-resident
            pl.BlockSpec((1, H1), lambda i: (0, 0)),
            pl.BlockSpec((H1, H2), lambda i: (0, 0)),
            pl.BlockSpec((1, H2), lambda i: (0, 0)),
            pl.BlockSpec((H2, HEAD_PAD), lambda i: (0, 0)),
            pl.BlockSpec((1, HEAD_PAD), lambda i: (0, 0)),
        ],
        out_specs=pl.BlockSpec((TB, HEAD_PAD), lambda i: (i, 0)),
        compiler_params=pltpu.CompilerParams(
            dimension_semantics=("parallel",),
        ),
    )(x, p["w1"], p["b1"], p["w2"], p["b2"], p["wh"], p["bh"])


@functools.partial(jax.jit, static_argnames=("act_dim",))
def _policy_network_forward_jit(x, packed, act_dim):
    out = _forward_slab(x, packed)
    logits = out[:, :act_dim]
    value = out[:, act_dim:act_dim + 1]
    return logits, value


def policy_network_forward(x, packed_params, act_dim):
    """Pallas-backed equivalent of PolicyNetwork.forward(x) -> (logits, value)."""
    return _policy_network_forward_jit(x, packed_params, act_dim)


def pack_params(params):
    """One-time param prep: fuse action+value heads into a lane-dense (H2, 128)
    weight and cast matmul weights to bf16 (biases stay f32)."""
    H2 = params["w2"].shape[1]
    act_dim = params["wa"].shape[1]
    assert act_dim + 1 <= HEAD_PAD, (
        f"fused head packing requires act_dim + 1 <= {HEAD_PAD}, got {act_dim}"
    )
    wh = (
        jnp.zeros((H2, HEAD_PAD), jnp.float32)
        .at[:, :act_dim].set(params["wa"])
        .at[:, act_dim:act_dim + 1].set(params["wv"])
    )
    bh = (
        jnp.zeros((1, HEAD_PAD), jnp.float32)
        .at[:, :act_dim].set(params["ba"])
        .at[:, act_dim:act_dim + 1].set(params["bv"])
    )
    return dict(
        w1=params["w1"].astype(jnp.bfloat16),
        b1=params["b1"].astype(jnp.float32),
        w2=params["w2"].astype(jnp.bfloat16),
        b2=params["b2"].astype(jnp.float32),
        wh=wh.astype(jnp.bfloat16),
        bh=bh,
    )


def init_params(key, obs_dim, act_dim, hidden_sizes=(128, 128)):
    """Deterministic parameter init (shapes match the PyTorch module)."""
    h1, h2 = hidden_sizes
    keys = jax.random.split(key, 8)

    def lin(kw, kb, fan_in, fan_out):
        bound = 1.0 / jnp.sqrt(fan_in)
        w = jax.random.uniform(kw, (fan_in, fan_out), jnp.float32, -bound, bound)
        b = jax.random.uniform(kb, (1, fan_out), jnp.float32, -bound, bound)
        return w, b

    w1, b1 = lin(keys[0], keys[1], obs_dim, h1)
    w2, b2 = lin(keys[2], keys[3], h1, h2)
    wa, ba = lin(keys[4], keys[5], h2, act_dim)
    wv, bv = lin(keys[6], keys[7], h2, 1)
    return dict(w1=w1, b1=b1, w2=w2, b2=b2, wa=wa, ba=ba, wv=wv, bv=bv)


def reference_forward(x, p):
    """Pure-JAX f32 reference for correctness checking."""
    h = jnp.maximum(x @ p["w1"] + p["b1"], 0.0)
    h = jnp.maximum(h @ p["w2"] + p["b2"], 0.0)
    return h @ p["wa"] + p["ba"], h @ p["wv"] + p["bv"]


# TODO(synk): act()/evaluate() (categorical sampling, log_prob, entropy) are left
# to plain JAX on the slab consumers; only forward() is implemented as a kernel.


if __name__ == "__main__":
    obs_dim, act_dim = 32, 8
    key = jax.random.PRNGKey(0)
    k_x, k_x2, k_p = jax.random.split(key, 3)

    params = init_params(k_p, obs_dim, act_dim, hidden_sizes=(128, 128))
    packed = pack_params(params)

    # bf16-operand / f32-accumulate tolerance vs. the f32 reference
    ATOL, RTOL = 3e-2, 3e-2

    # --- small per-environment-step batch (single grid step) ---------------
    batch = 8
    x = jax.random.normal(k_x, (batch, obs_dim), dtype=jnp.float32)
    logits, value = policy_network_forward(x, packed, act_dim)
    jax.block_until_ready((logits, value))

    ref_logits, ref_value = reference_forward(x, params)
    assert logits.shape == (batch, act_dim)
    assert value.shape == (batch, 1)
    assert jnp.allclose(logits, ref_logits, atol=ATOL, rtol=RTOL)
    assert jnp.allclose(value, ref_value, atol=ATOL, rtol=RTOL)

    # --- larger, non-tile-multiple batch (multi-step grid, partial block) --
    batch2 = 300
    x2 = jax.random.normal(k_x2, (batch2, obs_dim), dtype=jnp.float32)
    logits2, value2 = policy_network_forward(x2, packed, act_dim)
    jax.block_until_ready((logits2, value2))

    ref_logits2, ref_value2 = reference_forward(x2, params)
    assert logits2.shape == (batch2, act_dim)
    assert value2.shape == (batch2, 1)
    assert jnp.allclose(logits2, ref_logits2, atol=ATOL, rtol=RTOL)
    assert jnp.allclose(value2, ref_value2, atol=ATOL, rtol=RTOL)

    print("KERNEL_OK")
</pallas_src>

<mosaic_0001>
module attributes {stable_mosaic.version = 11 : i64} {
  func.func @policy_net_kernel(%arg0: i32, %arg1: memref<8x32xf32, #tpu.memory_space<vmem>>, %arg2: memref<32x128xbf16, #tpu.memory_space<vmem>>, %arg3: memref<1x128xf32, #tpu.memory_space<vmem>>, %arg4: memref<128x128xbf16, #tpu.memory_space<vmem>>, %arg5: memref<1x128xf32, #tpu.memory_space<vmem>>, %arg6: memref<128x128xbf16, #tpu.memory_space<vmem>>, %arg7: memref<1x128xf32, #tpu.memory_space<vmem>>, %arg8: memref<8x128xf32, #tpu.memory_space<vmem>>) attributes {dimension_semantics = [#tpu.dimension_semantics<parallel>], iteration_bounds = array<i64: 1>, scalar_prefetch = 0 : i64, scratch_operands = 0 : i64, tpu.core_type = #tpu.core_type<tc>, window_params = [{transform_indices = @transform_0, window_bounds = array<i64: 8, 32>}, {pipeline_mode = #tpu.pipeline_mode<synchronous>, transform_indices = @transform_1, window_bounds = array<i64: 32, 128>}, {pipeline_mode = #tpu.pipeline_mode<synchronous>, transform_indices = @transform_2, window_bounds = array<i64: 1, 128>}, {pipeline_mode = #tpu.pipeline_mode<synchronous>, transform_indices = @transform_3, window_bounds = array<i64: 128, 128>}, {pipeline_mode = #tpu.pipeline_mode<synchronous>, transform_indices = @transform_4, window_bounds = array<i64: 1, 128>}, {pipeline_mode = #tpu.pipeline_mode<synchronous>, transform_indices = @transform_5, window_bounds = array<i64: 128, 128>}, {pipeline_mode = #tpu.pipeline_mode<synchronous>, transform_indices = @transform_6, window_bounds = array<i64: 1, 128>}, {transform_indices = @transform_7, window_bounds = array<i64: 8, 128>}]} {
    %c0 = arith.constant 0 : index
    %c0_0 = arith.constant 0 : index
    %0 = vector.load %arg1[%c0, %c0_0] : memref<8x32xf32, #tpu.memory_space<vmem>>, vector<8x32xf32>
    %1 = arith.truncf %0 : vector<8x32xf32> to vector<8x32xbf16>
    %c0_1 = arith.constant 0 : index
    %c0_2 = arith.constant 0 : index
    %2 = vector.load %arg2[%c0_1, %c0_2] : memref<32x128xbf16, #tpu.memory_space<vmem>>, vector<32x128xbf16>
    %cst = arith.constant dense<0.000000e+00> : vector<8x128xf32>
    %3 = tpu.matmul %1, %2, %cst {dimension_numbers = #tpu.dot_dimension_numbers<[1], [0], [0], [1], [0, 0, 1, 1], [], []>} : vector<8x32xbf16>, vector<32x128xbf16>, vector<8x128xf32> -> vector<8x128xf32>
    %c0_3 = arith.constant 0 : index
    %c0_4 = arith.constant 0 : index
    %4 = vector.load %arg3[%c0_3, %c0_4] : memref<1x128xf32, #tpu.memory_space<vmem>>, vector<1x128xf32>
    %5 = vector.broadcast %4 : vector<1x128xf32> to vector<8x128xf32>
    %6 = arith.addf %3, %5 : vector<8x128xf32>
    %cst_5 = arith.constant 0.000000e+00 : f32
    %7 = vector.broadcast %cst_5 : f32 to vector<8x128xf32>
    %8 = arith.maximumf %6, %7 : vector<8x128xf32>
    %9 = arith.truncf %8 : vector<8x128xf32> to vector<8x128xbf16>
    %c0_6 = arith.constant 0 : index
    %c0_7 = arith.constant 0 : index
    %10 = vector.load %arg4[%c0_6, %c0_7] : memref<128x128xbf16, #tpu.memory_space<vmem>>, vector<128x128xbf16>
    %cst_8 = arith.constant dense<0.000000e+00> : vector<8x128xf32>
    %11 = tpu.matmul %9, %10, %cst_8 {dimension_numbers = #tpu.dot_dimension_numbers<[1], [0], [0], [1], [0, 0, 1, 1], [], []>} : vector<8x128xbf16>, vector<128x128xbf16>, vector<8x128xf32> -> vector<8x128xf32>
    %c0_9 = arith.constant 0 : index
    %c0_10 = arith.constant 0 : index
    %12 = vector.load %arg5[%c0_9, %c0_10] : memref<1x128xf32, #tpu.memory_space<vmem>>, vector<1x128xf32>
    %13 = vector.broadcast %12 : vector<1x128xf32> to vector<8x128xf32>
    %14 = arith.addf %11, %13 : vector<8x128xf32>
    %cst_11 = arith.constant 0.000000e+00 : f32
    %15 = vector.broadcast %cst_11 : f32 to vector<8x128xf32>
    %16 = arith.maximumf %14, %15 : vector<8x128xf32>
    %17 = arith.truncf %16 : vector<8x128xf32> to vector<8x128xbf16>
    %c0_12 = arith.constant 0 : index
    %c0_13 = arith.constant 0 : index
    %18 = vector.load %arg6[%c0_12, %c0_13] : memref<128x128xbf16, #tpu.memory_space<vmem>>, vector<128x128xbf16>
    %cst_14 = arith.constant dense<0.000000e+00> : vector<8x128xf32>
    %19 = tpu.matmul %17, %18, %cst_14 {dimension_numbers = #tpu.dot_dimension_numbers<[1], [0], [0], [1], [0, 0, 1, 1], [], []>} : vector<8x128xbf16>, vector<128x128xbf16>, vector<8x128xf32> -> vector<8x128xf32>
    %c0_15 = arith.constant 0 : index
    %c0_16 = arith.constant 0 : index
    %20 = vector.load %arg7[%c0_15, %c0_16] : memref<1x128xf32, #tpu.memory_space<vmem>>, vector<1x128xf32>
    %21 = vector.broadcast %20 : vector<1x128xf32> to vector<8x128xf32>
    %22 = arith.addf %19, %21 : vector<8x128xf32>
    %c0_17 = arith.constant 0 : index
    %c0_18 = arith.constant 0 : index
    %23 = vector.load %arg8[%c0_17, %c0_18] : memref<8x128xf32, #tpu.memory_space<vmem>>, vector<8x128xf32>
    tpu.vector_store %arg8[%c0_17, %c0_18], %22 {strides = array<i32>} : memref<8x128xf32, #tpu.memory_space<vmem>>, vector<8x128xf32>,
    return
  }
  func.func @transform_0(%arg0: i32) -> (i32, i32) {
    %c0_i32 = arith.constant 0 : i32
    %c0_i32_0 = arith.constant 0 : i32
    return %arg0, %c0_i32 : i32, i32
  }
  func.func @transform_1(%arg0: i32) -> (i32, i32) {
    %c0_i32 = arith.constant 0 : i32
    %c0_i32_0 = arith.constant 0 : i32
    %c0_i32_1 = arith.constant 0 : i32
    return %c0_i32, %c0_i32_0 : i32, i32
  }
  func.func @transform_2(%arg0: i32) -> (i32, i32) {
    %c0_i32 = arith.constant 0 : i32
    %c0_i32_0 = arith.constant 0 : i32
    %c0_i32_1 = arith.constant 0 : i32
    return %c0_i32, %c0_i32_0 : i32, i32
  }
  func.func @transform_3(%arg0: i32) -> (i32, i32) {
    %c0_i32 = arith.constant 0 : i32
    %c0_i32_0 = arith.constant 0 : i32
    %c0_i32_1 = arith.constant 0 : i32
    return %c0_i32, %c0_i32_0 : i32, i32
  }
  func.func @transform_4(%arg0: i32) -> (i32, i32) {
    %c0_i32 = arith.constant 0 : i32
    %c0_i32_0 = arith.constant 0 : i32
    %c0_i32_1 = arith.constant 0 : i32
    return %c0_i32, %c0_i32_0 : i32, i32
  }
  func.func @transform_5(%arg0: i32) -> (i32, i32) {
    %c0_i32 = arith.constant 0 : i32
    %c0_i32_0 = arith.constant 0 : i32
    %c0_i32_1 = arith.constant 0 : i32
    return %c0_i32, %c0_i32_0 : i32, i32
  }
  func.func @transform_6(%arg0: i32) -> (i32, i32) {
    %c0_i32 = arith.constant 0 : i32
    %c0_i32_0 = arith.constant 0 : i32
    %c0_i32_1 = arith.constant 0 : i32
    return %c0_i32, %c0_i32_0 : i32, i32
  }
  func.func @transform_7(%arg0: i32) -> (i32, i32) {
    %c0_i32 = arith.constant 0 : i32
    %c0_i32_0 = arith.constant 0 : i32
    return %arg0, %c0_i32 : i32, i32
  }
}

</mosaic_0001>

<bundles_post_ra>
// kernel: _policy_network_forward_jit.1
= control target key start
LH: loop header
LB: loop body
LE: loop exit
PB: predicated region body
PF: predicated region fallthrough
CT: control target
= control target key end

     0   :  { %12 = vsyncpa [#allocation3], 0  ;;  %s691_s0 = inlined_call_operand.hbm [shape: f32[8,32], index: 0, kind: input, shape index: {}]   ;;  %s692_s1 = inlined_call_operand.hbm [shape: bf16[32,128], index: 1, kind: input, shape index: {}]   ;;  %s693_s2 = inlined_call_operand.vmem [shape: f32[1,128], index: 2, kind: input, shape index: {}]   ;;  %s694_s3 = inlined_call_operand.hbm [shape: bf16[128,128], index: 3, kind: input, shape index: {}]   ;;  %s695_s4 = inlined_call_operand.vmem [shape: f32[1,128], index: 4, kind: input, shape index: {}]   ;;  %s696_s5 = inlined_call_operand.hbm [shape: bf16[128,128], index: 5, kind: input, shape index: {}]   ;;  %s697_s6 = inlined_call_operand.vmem [shape: f32[1,128], index: 6, kind: input, shape index: {}]   ;;  %s698_s7 = inlined_call_operand.vmem [shape: f32[8,128], index: 7, kind: output, shape index: {}]  }
   0x1   :  { %13 = vsyncpa [#allocation5], 0 }
   0x2   :  { %14 = vsyncpa [#allocation8], 0  ;;  %s586_s24 = smov [#allocation4]  }
   0x3   :  { %s30_s25 = sshll.u32 %s586_s24, 4  ;;  %s31_s25 = int_to_ptr.vmem [resolvable:$true] %s30_s25 }
   0x4   :  { %s508_s26 = scalar_lea.vmem %s31_s25, 256  ;;  %p513_p1 = scmp.lt.s32.totalorder %s31_s25, %s31_s25 }
   0x5   :  { %p509_p0 = scmp.ne.s32.totalorder %s31_s25, %s508_s26  ;;  %p514_p2 = scmp.lt.s32.totalorder %s508_s26, %s508_s26 }
   0x7   :  { %p515_p3 = por %p514_p2, %p513_p1 }
   0x9   :  { %p516_p4 = pnand %p515_p3, %p509_p0 }
   0xb   :  { %519 = shalt.err (!%p516_p4)
}
   0xc   :  { %s587_s27 = smov 64   ;;  %s588_s28 = smov 4  }
   0xd   :  { %36 = dma.hbm_to_vmem [thread:$0]  %s692_s1, 256, %s31_s25, [#allocation5], %s587_s27, %s587_s27, %s588_s28  }
   0xe   :  { %s589_s8 = smov [#allocation2]   ;;  %s590_s10 = smov [#allocation6]  }
   0xf   :  { %s21_s9 = sshll.u32 %s589_s8, 4  ;;  %s44_s11 = sshll.u32 %s590_s10, 4  ;;  %s22_s9 = int_to_ptr.vmem [resolvable:$true] %s21_s9  ;;  %s45_s11 = int_to_ptr.vmem [resolvable:$true] %s44_s11 }
  0x10   :  { %s528_s12 = scalar_lea.vmem %s22_s9, 128  ;;  %p533_p6 = scmp.lt.s32.totalorder %s22_s9, %s22_s9 }
  0x11   :  { %p529_p5 = scmp.ne.s32.totalorder %s22_s9, %s528_s12  ;;  %p534_p7 = scmp.lt.s32.totalorder %s528_s12, %s528_s12 }
  0x13   :  { %p535_p8 = por %p534_p7, %p533_p6 }
  0x15   :  { %p536_p9 = pnand %p535_p8, %p529_p5 }
  0x17   :  { %539 = shalt.err (!%p536_p9)
}
  0x18   :  { %24 = dma.hbm_to_vmem [thread:$0]  %s691_s0, 128, %s22_s9, [#allocation3]  }
  0x19   :  { %s548_s15 = scalar_lea.vmem %s45_s11, 1024  ;;  %p553_p11 = scmp.lt.s32.totalorder %s45_s11, %s45_s11 }
  0x1a   :  { %p549_p10 = scmp.ne.s32.totalorder %s45_s11, %s548_s15  ;;  %p554_p12 = scmp.lt.s32.totalorder %s548_s15, %s548_s15 }
  0x1c   :  { %p555_p13 = por %p554_p12, %p553_p11 }
  0x1e   :  { %p556_p0 = pnand %p555_p13, %p549_p10 }
  0x20   :  { %559 = shalt.err (!%p556_p0)
}
  0x21   :  { %50 = dma.hbm_to_vmem [thread:$0]  %s694_s3, 1024, %s45_s11, [#allocation5], %s587_s27, %s587_s27, %s588_s28  }
  0x22   :  { %s591_s17 = smov [#allocation7]  }
  0x23   :  { %s58_s18 = sshll.u32 %s591_s17, 4  ;;  %s59_s18 = int_to_ptr.vmem [resolvable:$true] %s58_s18 }
  0x24   :  { %s568_s19 = scalar_lea.vmem %s59_s18, 1024  ;;  %p573_p2 = scmp.lt.s32.totalorder %s59_s18, %s59_s18 }
  0x25   :  { %p569_p1 = scmp.ne.s32.totalorder %s59_s18, %s568_s19  ;;  %p574_p3 = scmp.lt.s32.totalorder %s568_s19, %s568_s19 }
  0x27   :  { %p575_p4 = por %p574_p3, %p573_p2 }
  0x29   :  { %p576_p5 = pnand %p575_p4, %p569_p1 }
  0x2b   :  { %579 = shalt.err (!%p576_p5)
}
  0x2c   :  { %64 = dma.hbm_to_vmem [thread:$0]  %s696_s5, 1024, %s59_s18, [#allocation8], %s587_s27, %s587_s27, %s588_s28  }
  0x2d   :  { %580 = dma.done.wait [#allocation3], 128  }
  0x2e   :  { %581 = vsyncadd [#allocation3], 4294967168 }
  0x2f   :  { %582 = dma.done.wait [#allocation5], 1280  }
  0x30   :  { %583 = vsyncadd [#allocation5], 4294966016 }
  0x31   :  { %584 = dma.done.wait [#allocation8], 1024  }
  0x32   :  { %585 = vsyncadd [#allocation8], 4294966272  ;;  %v592_v0 = vmov 0.0   ;;  %vm593_vm0 = vmmov 0   ;;  %v482_v1 = vld [vmem:[#allocation4 + $0x8] sm:$0xff]   ;;  %v483_v2 = vld [vmem:[#allocation4] sm:$0xff]  }
  0x33   :  { %426 = vmatprep.subr.bf16.mxu0 %v592_v0  ;;  %430 = vmatprep.mubr.msk.bf16.mxu0 %vm593_vm0, %v592_v0  ;;  %v80_v3 = vld [vmem:[#allocation2] sm:$0xff]  ;;  %v484_v4 = vld [vmem:[#allocation6 + $0x38] sm:$0xff]   ;;  %v485_v6 = vld [vmem:[#allocation6 + $0x30] sm:$0xff]   ;;  %vm105_vm1 = vcmask 261120  }
  0x34   :  { %434 = vmatprep.subr.bf16.mxu1 %v592_v0  ;;  %450 = vmatprep.mubr.msk.bf16.mxu1 %vm593_vm0, %v592_v0  ;;  %v81_v5 = vpack.c.bf16 %v80_v3, %v80_v3  ;;  %v486_v7 = vld [vmem:[#allocation6 + $0x28] sm:$0xff]   ;;  %v487_v8 = vld [vmem:[#allocation6 + $0x20] sm:$0xff]   ;;  %v488_v9 = vld [vmem:[#allocation6 + $0x18] sm:$0xff]  }
  0x35   :  { %427 = vmatpush3.bf16.msra.mxu0 %v482_v1  ;;  %435 = vmatpush3.bf16.msra.mxu1 %v484_v4  ;;  %v489_v10 = vld [vmem:[#allocation6 + $0x10] sm:$0xff]   ;;  %v490_v11 = vld [vmem:[#allocation6 + $0x8] sm:$0xff]   ;;  %v491_v12 = vld [vmem:[#allocation6] sm:$0xff]  }
  0x36   :  { %428 = vmatprep.subr.bf16.mxu0 %v592_v0  ;;  %436 = vmatprep.subr.bf16.mxu1 %v592_v0  ;;  %v492_v13 = vld [vmem:[#allocation7 + $0x38] sm:$0xff]   ;;  %v493_v14 = vld [vmem:[#allocation7 + $0x30] sm:$0xff]   ;;  %v494_v15 = vld [vmem:[#allocation7 + $0x28] sm:$0xff]  }
  0x37   :  { %v495_v16 = vld [vmem:[#allocation7 + $0x20] sm:$0xff]   ;;  %v496_v17 = vld [vmem:[#allocation7 + $0x18] sm:$0xff]   ;;  %v497_v18 = vld [vmem:[#allocation7 + $0x10] sm:$0xff]  }
  0x38   :  { %v383_v19 = vld [vmem:[%s693_s2] ss:$0 sm:$0xff]  ;;  %v499_v28 = vld [vmem:[#allocation7] sm:$0xff]  }
  0x39   :  { %429 = vmatpush3.bf16.msra.mxu0 %v483_v2  ;;  %437 = vmatpush3.bf16.msra.mxu1 %v485_v6  ;;  %v498_v27 = vld [vmem:[#allocation7 + $0x8] sm:$0xff]  }
  0x3a   :  { %454 = vmatprep.subr.bf16.mxu0 %v592_v0  ;;  %438 = vmatprep.subr.bf16.mxu1 %v592_v0  ;;  %v387_v29 = vld [vmem:[%s695_s4] ss:$0 sm:$0xff] }
  0x3b   :  { %v396_v37 = vld [vmem:[%s697_s6] ss:$0 sm:$0xff] }
  0x3c   :  { %431 = vmatmul.mubr.msk.bf16.vlgmr.msra.gmra.mxu0 %vm105_vm1, %v81_v5 }
  0x3d   :  { %470 = vmatprep.mubr.msk.bf16.mxu0 %vm593_vm0, %v592_v0  ;;  %439 = vmatpush3.bf16.msra.mxu1 %v486_v7 }
  0x3e   :  { %440 = vmatprep.subr.bf16.mxu1 %v592_v0  ;;  %455 = vmatpush3.bf16.msra.mxu0 %v492_v13 }
  0x3f   :  { %456 = vmatprep.subr.bf16.mxu0 %v592_v0 }
  0x41   :  { %441 = vmatpush3.bf16.msra.mxu1 %v487_v8 }
  0x42   :  { %442 = vmatprep.subr.bf16.mxu1 %v592_v0  ;;  %457 = vmatpush3.bf16.msra.mxu0 %v493_v14 }
  0x43   :  { %458 = vmatprep.subr.bf16.mxu0 %v592_v0 }
  0x45   :  { %443 = vmatpush3.bf16.msra.mxu1 %v488_v9 }
  0x46   :  { %444 = vmatprep.subr.bf16.mxu1 %v592_v0  ;;  %459 = vmatpush3.bf16.msra.mxu0 %v494_v15 }
  0x47   :  { %460 = vmatprep.subr.bf16.mxu0 %v592_v0 }
  0x49   :  { %445 = vmatpush3.bf16.msra.mxu1 %v489_v10 }
  0x4a   :  { %446 = vmatprep.subr.bf16.mxu1 %v592_v0  ;;  %461 = vmatpush3.bf16.msra.mxu0 %v495_v16 }
  0x4b   :  { %462 = vmatprep.subr.bf16.mxu0 %v592_v0 }
  0x4d   :  { %447 = vmatpush3.bf16.msra.mxu1 %v490_v11 }
  0x4e   :  { %448 = vmatprep.subr.bf16.mxu1 %v592_v0  ;;  %463 = vmatpush3.bf16.msra.mxu0 %v496_v17 }
  0x4f   :  { %464 = vmatprep.subr.bf16.mxu0 %v592_v0 }
  0x51   :  { %449 = vmatpush3.bf16.msra.mxu1 %v491_v12 }
  0x52   :  { %465 = vmatpush3.bf16.msra.mxu0 %v497_v18 }
  0x53   :  { %466 = vmatprep.subr.bf16.mxu0 %v592_v0 }
  0x56   :  { %467 = vmatpush3.bf16.msra.mxu0 %v498_v27 }
  0x57   :  { %468 = vmatprep.subr.bf16.mxu0 %v592_v0 }
  0x5a   :  { %469 = vmatpush3.bf16.msra.mxu0 %v499_v28 }
  0xfc   :  { %v143_v20 = vpop.f32.mrf.mxu0 }
  0xfd   :  { %v144_v21 = vadd.f32 %v383_v19, %v143_v20 }
  0xfe   :  { %v432_v22 = vpop.f32.mrf.mxu0 }
  0xff   :  { %v149_v23 = vmax.f32 %v144_v21, 0.0 }
 0x100   :  { %v146_v24 = vpop.f32.mrf.mxu0 }
 0x101   :  { %v150_v25 = vpack.c.bf16 %v149_v23, %v149_v23 }
 0x102   :  { %v433_v26 = vpop.f32.mrf.mxu0 }
 0x103   :  { %451 = vmatmul.mubr.bf16.vlgmr.msra.gmra.mxu1 %v150_v25 }
 0x1c3   :  { %v256_v30 = vpop.f32.mrf.mxu1 }
 0x1c4   :  { %v257_v31 = vadd.f32 %v387_v29, %v256_v30 }
 0x1c5   :  { %v452_v32 = vpop.f32.mrf.mxu1 }
 0x1c6   :  { %v262_v33 = vmax.f32 %v257_v31, 0.0 }
 0x1c7   :  { %v259_v34 = vpop.f32.mrf.mxu1 }
 0x1c8   :  { %v263_v35 = vpack.c.bf16 %v262_v33, %v262_v33 }
 0x1c9   :  { %v453_v36 = vpop.f32.mrf.mxu1 }
 0x1ca   :  { %471 = vmatmul.mubr.bf16.vlgmr.msra.gmra.mxu0 %v263_v35 }
 0x28a   :  { %v369_v38 = vpop.f32.mrf.mxu0 }
 0x28b   :  { %v370_v39 = vadd.f32 %v396_v37, %v369_v38 }
 0x28c   :  { %v472_v40 = vpop.f32.mrf.mxu0 }
 0x28d   :  { %375 = vst [vmem:[%s698_s7] sm:$0xff] %v370_v39 }
 0x28e   :  { %v372_v41 = vpop.f32.mrf.mxu0 }
 0x290   :  { %v473_v42 = vpop.f32.mrf.mxu0 }
 0x291   :  { %380 = vsyncpa [#allocation3], 1 }
 0x292   :  { %381 = vsyncpa [#allocation5], 1 }
 0x293   :  { %382 = vsyncpa [#allocation8], 1 }

</bundles_post_ra>
